<compile_context>
chip_gen: v5e
topology: v5e:2x2
jax: 0.10.0
libtpu: 0.0.40
codegen_flags: <defaults>
</compile_context>

<pallas_src>
import jax
import jax.numpy as jnp
from jax.experimental import pallas as pl
from jax.experimental.pallas import tpu as pltpu


TB_MAX = 1024  # max batch-tile rows; keeps live VMEM ~3 MiB on all generations


def _round_up(n, m):
    return ((n + m - 1) // m) * m


def mlp_kernel(x_ref, w1_ref, b1_ref, w2_ref, b2_ref, w3_ref, b3_ref, o_ref):
    # x arrives in its stored dtype (f32); cast to bf16 here (VPU op, hidden
    # under the pipelined x DMA) instead of in a separate HBM pass.
    x = x_ref[...].astype(jnp.bfloat16)                       # [tb, 64]

    # layer 1 (MXU, bf16 operands, f32 accumulate): [tb,64] @ [64,128]
    h1 = jnp.dot(x, w1_ref[...], preferred_element_type=jnp.float32)
    h1 = jnp.maximum(h1 + b1_ref[...], 0.0)                   # [tb, 128] f32

    # layer 2 (MXU, bf16 operands, f32 accumulate): [tb,128] @ [128,32]
    h2 = jnp.dot(h1.astype(jnp.bfloat16), w2_ref[...],
                 preferred_element_type=jnp.float32)
    h2 = jnp.maximum(h2 + b2_ref[...], 0.0)                   # [tb, 32] f32

    # layer 3: out[n] = sum_k h2[n, k] * w3[0, k] + b3, contracted with the
    # batch rows landing on the *lane* axis -> [1, tb] lane-dense result and
    # unmasked stores (same NT dot_general pattern used by attention kernels).
    out = jax.lax.dot_general(
        w3_ref[...], h2,                                      # [1,32] , [tb,32]
        dimension_numbers=(((1,), (1,)), ((), ())),
        preferred_element_type=jnp.float32)                   # [1, tb] f32
    o_ref[...] = (out + b3_ref[...]).astype(o_ref.dtype)


def mlp_forward(x, params, *, tb=None):
    """x: [B, 64] float32 (or bf16). Returns [B, 1] float32 (inference)."""
    w1, b1, w2, b2, w3, b3 = params
    B = x.shape[0]

    # Guarantee at least one full 128-row block (tiny, one-off pad for small B).
    x_k = x
    B_eff = B
    if B_eff < 128:
        x_k = jnp.pad(x_k, ((0, 128 - B_eff), (0, 0)))
        B_eff = 128

    # Batch tile: multiple of 128 (bf16 sublane packing + lane-dense output),
    # capped at TB_MAX, never larger than the array.
    tb_user = tb
    tb = TB_MAX if tb_user is None else int(tb_user)
    tb = max(128, (min(tb, TB_MAX) // 128) * 128)
    tb = min(tb, (B_eff // 128) * 128)
    n_tiles = pl.cdiv(B_eff, tb)
    # Prefer >= 2 grid steps so the "parallel" axis spans both v7x TensorCores.
    if tb_user is None and n_tiles < 2 and tb > 128:
        tb = max(128, _round_up(tb // 2, 128))
        n_tiles = pl.cdiv(B_eff, tb)

    # MXU-layer weights as bf16 (tiny one-off casts); biases / w3 / b3 stay f32.
    w1b = w1.astype(jnp.bfloat16)
    w2b = w2.astype(jnp.bfloat16)

    # Weights/biases use constant block indices -> fetched once, VMEM-resident
    # across all grid steps; only the x tile and the [1, tb] out tile stream.
    def const(shape):
        return pl.BlockSpec(shape, lambda i: (0,) * len(shape))

    out = pl.pallas_call(
        mlp_kernel,
        out_shape=jax.ShapeDtypeStruct((1, n_tiles * tb), jnp.float32),
        grid=(n_tiles,),
        in_specs=[
            pl.BlockSpec((tb, 64), lambda i: (i, 0)),   # x tile (pipelined, f32)
            const((64, 128)),                           # w1 (bf16)
            const((1, 128)),                            # b1 (f32)
            const((128, 32)),                           # w2 (bf16)
            const((1, 32)),                             # b2 (f32)
            const((1, 32)),                             # w3 row (f32)
            const((1, 1)),                              # b3 (f32)
        ],
        out_specs=pl.BlockSpec((1, tb), lambda i: (0, i)),
        compiler_params=pltpu.CompilerParams(
            dimension_semantics=("parallel",),
        ),
    )(x_k, w1b, b1, w2b, b2, w3, b3)

    # Free relayout back to the module's [B, 1] output (tiny array).
    return out[0, :B].reshape(B, 1)


def init_params(key):
    """Deterministic init mimicking torch.nn.Linear default U[-1/sqrt(fan_in), +]."""
    def linear(key, fan_in, fan_out):
        kw, kb = jax.random.split(key)
        bound = 1.0 / jnp.sqrt(fan_in)
        # stored as [in, out] so the kernel does x @ W
        w = jax.random.uniform(kw, (fan_in, fan_out), jnp.float32, -bound, bound)
        b = jax.random.uniform(kb, (1, fan_out), jnp.float32, -bound, bound)
        return w, b

    k1, k2, k3 = jax.random.split(key, 3)
    w1, b1 = linear(k1, 64, 128)
    w2, b2 = linear(k2, 128, 32)
    w3_col, b3 = linear(k3, 32, 1)
    w3 = w3_col.T                      # keep as a [1, 32] row for layer 3
    return w1, b1, w2, b2, w3, b3


def mlp_reference(x, params):
    """Pure-JAX f32 reference (inference forward)."""
    w1, b1, w2, b2, w3, b3 = params
    h1 = jnp.maximum(x @ w1 + b1, 0.0)
    h2 = jnp.maximum(h1 @ w2 + b2, 0.0)
    return h2 @ w3.T + b3


if __name__ == "__main__":
    key = jax.random.PRNGKey(0)
    k_x1, k_x2, k_x3, k_p = jax.random.split(key, 4)
    params = init_params(k_p)

    def check(B, k, tb=None):
        x = jax.random.normal(k, (B, 64), jnp.float32)
        out = jax.block_until_ready(mlp_forward(x, params, tb=tb))
        ref = mlp_reference(x, params)
        assert out.shape == (B, 1), out.shape
        # bf16 MXU operands vs f32 reference -> ~1e-2-level relative error.
        assert jnp.allclose(out, ref, atol=5e-2, rtol=5e-2), \
            f"mismatch vs reference (B={B})"

    check(256, k_x1)   # two exact 128-row tiles (exercises the batch grid)
    check(300, k_x2)   # ragged batch -> partial last block, no padding copy
    check(8, k_x3)     # tiny batch -> one-off pad to a single 128-row tile

    print("KERNEL_OK")
</pallas_src>

<mosaic_0001>
module attributes {stable_mosaic.version = 11 : i64} {
  func.func @mlp_kernel(%arg0: i32, %arg1: memref<128x64xf32, #tpu.memory_space<vmem>>, %arg2: memref<64x128xbf16, #tpu.memory_space<vmem>>, %arg3: memref<1x128xf32, #tpu.memory_space<vmem>>, %arg4: memref<128x32xbf16, #tpu.memory_space<vmem>>, %arg5: memref<1x32xf32, #tpu.memory_space<vmem>>, %arg6: memref<1x32xf32, #tpu.memory_space<vmem>>, %arg7: memref<1x1xf32, #tpu.memory_space<vmem>>, %arg8: memref<1x128xf32, #tpu.memory_space<vmem>>) attributes {dimension_semantics = [#tpu.dimension_semantics<parallel>], iteration_bounds = array<i64: 2>, scalar_prefetch = 0 : i64, scratch_operands = 0 : i64, tpu.core_type = #tpu.core_type<tc>, window_params = [{transform_indices = @transform_0, window_bounds = array<i64: 128, 64>}, {pipeline_mode = #tpu.pipeline_mode<synchronous>, transform_indices = @transform_1, window_bounds = array<i64: 64, 128>}, {pipeline_mode = #tpu.pipeline_mode<synchronous>, transform_indices = @transform_2, window_bounds = array<i64: 1, 128>}, {pipeline_mode = #tpu.pipeline_mode<synchronous>, transform_indices = @transform_3, window_bounds = array<i64: 128, 32>}, {pipeline_mode = #tpu.pipeline_mode<synchronous>, transform_indices = @transform_4, window_bounds = array<i64: 1, 32>}, {pipeline_mode = #tpu.pipeline_mode<synchronous>, transform_indices = @transform_5, window_bounds = array<i64: 1, 32>}, {pipeline_mode = #tpu.pipeline_mode<synchronous>, transform_indices = @transform_6, window_bounds = array<i64: 1, 1>}, {transform_indices = @transform_7, window_bounds = array<i64: 1, 128>}]} {
    %c0 = arith.constant 0 : index
    %c0_0 = arith.constant 0 : index
    %0 = vector.load %arg1[%c0, %c0_0] : memref<128x64xf32, #tpu.memory_space<vmem>>, vector<128x64xf32>
    %1 = arith.truncf %0 : vector<128x64xf32> to vector<128x64xbf16>
    %c0_1 = arith.constant 0 : index
    %c0_2 = arith.constant 0 : index
    %2 = vector.load %arg2[%c0_1, %c0_2] : memref<64x128xbf16, #tpu.memory_space<vmem>>, vector<64x128xbf16>
    %cst = arith.constant dense<0.000000e+00> : vector<128x128xf32>
    %3 = tpu.matmul %1, %2, %cst {dimension_numbers = #tpu.dot_dimension_numbers<[1], [0], [0], [1], [0, 0, 1, 1], [], []>} : vector<128x64xbf16>, vector<64x128xbf16>, vector<128x128xf32> -> vector<128x128xf32>
    %c0_3 = arith.constant 0 : index
    %c0_4 = arith.constant 0 : index
    %4 = vector.load %arg3[%c0_3, %c0_4] : memref<1x128xf32, #tpu.memory_space<vmem>>, vector<1x128xf32>
    %5 = vector.broadcast %4 : vector<1x128xf32> to vector<128x128xf32>
    %6 = arith.addf %3, %5 : vector<128x128xf32>
    %cst_5 = arith.constant 0.000000e+00 : f32
    %7 = vector.broadcast %cst_5 : f32 to vector<128x128xf32>
    %8 = arith.maximumf %6, %7 : vector<128x128xf32>
    %9 = arith.truncf %8 : vector<128x128xf32> to vector<128x128xbf16>
    %c0_6 = arith.constant 0 : index
    %c0_7 = arith.constant 0 : index
    %10 = vector.load %arg4[%c0_6, %c0_7] : memref<128x32xbf16, #tpu.memory_space<vmem>>, vector<128x32xbf16>
    %cst_8 = arith.constant dense<0.000000e+00> : vector<128x32xf32>
    %11 = tpu.matmul %9, %10, %cst_8 {dimension_numbers = #tpu.dot_dimension_numbers<[1], [0], [0], [1], [0, 0, 1, 1], [], []>} : vector<128x128xbf16>, vector<128x32xbf16>, vector<128x32xf32> -> vector<128x32xf32>
    %c0_9 = arith.constant 0 : index
    %c0_10 = arith.constant 0 : index
    %12 = vector.load %arg5[%c0_9, %c0_10] : memref<1x32xf32, #tpu.memory_space<vmem>>, vector<1x32xf32>
    %13 = vector.broadcast %12 : vector<1x32xf32> to vector<128x32xf32>
    %14 = arith.addf %11, %13 : vector<128x32xf32>
    %cst_11 = arith.constant 0.000000e+00 : f32
    %15 = vector.broadcast %cst_11 : f32 to vector<128x32xf32>
    %16 = arith.maximumf %14, %15 : vector<128x32xf32>
    %c0_12 = arith.constant 0 : index
    %c0_13 = arith.constant 0 : index
    %17 = vector.load %arg6[%c0_12, %c0_13] : memref<1x32xf32, #tpu.memory_space<vmem>>, vector<1x32xf32>
    %cst_14 = arith.constant dense<0.000000e+00> : vector<1x128xf32>
    %18 = tpu.matmul %17, %16, %cst_14 {dimension_numbers = #tpu.dot_dimension_numbers<[1], [1], [0], [0], [0, 0, 1, 0], [], []>} : vector<1x32xf32>, vector<128x32xf32>, vector<1x128xf32> -> vector<1x128xf32>
    %c0_15 = arith.constant 0 : index
    %c0_16 = arith.constant 0 : index
    %19 = vector.load %arg7[%c0_15, %c0_16] : memref<1x1xf32, #tpu.memory_space<vmem>>, vector<1x1xf32>
    %20 = vector.broadcast %19 : vector<1x1xf32> to vector<1x128xf32>
    %21 = arith.addf %18, %20 : vector<1x128xf32>
    %c0_17 = arith.constant 0 : index
    %c0_18 = arith.constant 0 : index
    %22 = vector.load %arg8[%c0_17, %c0_18] : memref<1x128xf32, #tpu.memory_space<vmem>>, vector<1x128xf32>
    tpu.vector_store %arg8[%c0_17, %c0_18], %21 {strides = array<i32>} : memref<1x128xf32, #tpu.memory_space<vmem>>, vector<1x128xf32>,
    return
  }
  func.func @transform_0(%arg0: i32) -> (i32, i32) {
    %c0_i32 = arith.constant 0 : i32
    %c0_i32_0 = arith.constant 0 : i32
    return %arg0, %c0_i32 : i32, i32
  }
  func.func @transform_1(%arg0: i32) -> (i32, i32) {
    %c0_i32 = arith.constant 0 : i32
    %c0_i32_0 = arith.constant 0 : i32
    %c0_i32_1 = arith.constant 0 : i32
    return %c0_i32, %c0_i32_0 : i32, i32
  }
  func.func @transform_2(%arg0: i32) -> (i32, i32) {
    %c0_i32 = arith.constant 0 : i32
    %c0_i32_0 = arith.constant 0 : i32
    %c0_i32_1 = arith.constant 0 : i32
    return %c0_i32, %c0_i32_0 : i32, i32
  }
  func.func @transform_3(%arg0: i32) -> (i32, i32) {
    %c0_i32 = arith.constant 0 : i32
    %c0_i32_0 = arith.constant 0 : i32
    %c0_i32_1 = arith.constant 0 : i32
    return %c0_i32, %c0_i32_0 : i32, i32
  }
  func.func @transform_4(%arg0: i32) -> (i32, i32) {
    %c0_i32 = arith.constant 0 : i32
    %c0_i32_0 = arith.constant 0 : i32
    %c0_i32_1 = arith.constant 0 : i32
    return %c0_i32, %c0_i32_0 : i32, i32
  }
  func.func @transform_5(%arg0: i32) -> (i32, i32) {
    %c0_i32 = arith.constant 0 : i32
    %c0_i32_0 = arith.constant 0 : i32
    %c0_i32_1 = arith.constant 0 : i32
    return %c0_i32, %c0_i32_0 : i32, i32
  }
  func.func @transform_6(%arg0: i32) -> (i32, i32) {
    %c0_i32 = arith.constant 0 : i32
    %c0_i32_0 = arith.constant 0 : i32
    %c0_i32_1 = arith.constant 0 : i32
    return %c0_i32, %c0_i32_0 : i32, i32
  }
  func.func @transform_7(%arg0: i32) -> (i32, i32) {
    %c0_i32 = arith.constant 0 : i32
    %c0_i32_0 = arith.constant 0 : i32
    return %c0_i32, %arg0 : i32, i32
  }
}

</mosaic_0001>

<bundles_post_ra>
// kernel: tpu_custom_call.1
= control target key start
LH: loop header
LB: loop body
LE: loop exit
PB: predicated region body
PF: predicated region fallthrough
CT: control target
= control target key end

     0   :  { %s1157_s0 = inlined_call_operand.vmem [shape: f32[256,64], index: 0, kind: input, shape index: {}]   ;;  %s1158_s1 = inlined_call_operand.vmem [shape: bf16[64,128], index: 1, kind: input, shape index: {}]   ;;  %s1159_s2 = inlined_call_operand.vmem [shape: f32[1,128], index: 2, kind: input, shape index: {}]   ;;  %s1160_s3 = inlined_call_operand.vmem [shape: bf16[128,32], index: 3, kind: input, shape index: {}]   ;;  %s1161_s4 = inlined_call_operand.vmem [shape: f32[1,32], index: 4, kind: input, shape index: {}]   ;;  %s1162_s5 = inlined_call_operand.vmem [shape: f32[1,32], index: 5, kind: input, shape index: {}]   ;;  %s1163_s6 = inlined_call_operand.<no memory space> [shape: f32[1,1], index: 6, kind: input, shape index: {}]   ;;  %s1164_s7 = inlined_call_operand.hbm [shape: f32[1,256], index: 7, kind: output, shape index: {}]  }
   0x1   :  { %v12_v0 = vstv %s1163_s6 }
   0x2   :  { %13 = vst [vmem:[#allocation2] sm:$0x1] %v12_v0 }
   0x3   :  { %14 = vsyncpa [#allocation4], 0 }
   0x4   :  { %16 = vsyncpa [#allocation4 + $0x1], 0  ;;  %s985_s26 = smov 0   ;;  %s987_s27 = smov 0  }
   0x5   :  { %s989_s28 = smov 0   ;;  %s991_s29 = smov 0  }
   0x6 LB: > { %s1006_s6 = sadd.s32 4294967295, %s939_s29   ;;  %s721_s30 = sadd.s32 4294967294, %s939_s29   ;;  %s939_s29 = sphi %s991_s29, %s1170_s29   ;;  %s935_s28 = sphi %s989_s28, %s1169_s28   ;;  %s931_s27 = sphi %s987_s27, %s1168_s27   ;;  %s927_s26 = sphi %s985_s26, %s1167_s26  }
   0x7   : > { %s1010_s8 = sadd.s32 1, %s939_s29   ;;  %s181_s9 = sadd.s32 1, %s935_s28 }
   0x8   : > { %s178_s10 = ssub.s32 %s939_s29, %s1010_s8  ;;  %p191_p0 = scmp.ne.s32.totalorder %s935_s28, %s931_s27 }
   0x9   : > { %p179_p1 = scmp.eq.s32.totalorder %s178_s10, 0  ;;  %p192_p2 = scmp.eq.s32.totalorder %s1006_s6, 1 }
   0xa   : > { %p197_p3 = scmp.ne.s32.totalorder %s931_s27, %s927_s26  ;;  %p198_p4 = scmp.eq.s32.totalorder %s721_s30, 1 }
   0xb   : > { %s1021_s11 = scalar_select %p179_p1, %s935_s28, %s181_s9  }
   0xc   : > { %p1023_p5 = por %p192_p2, %p191_p0  ;;  %p1027_p6 = por %p198_p4, %p197_p3 }
   0xd   : > { %p724_p7 = scmp.ge.s32.totalorder %s939_s29, 1  ;;  %p243_p8 = scmp.lt.s32.totalorder %s939_s29, 3 }
   0xf   : > { %p244_p9 = pnand %p724_p7, %p243_p8 }
  0x10   : > { %s725_s16 = sshll.u32 (!%p244_p9), %s1006_s6, 4  ;;  %s662_s22 = scalar_lea.hbm (!%p244_p9), %s1164_s7, %s1006_s6 }
  0x11   : > { %247 = sbr.rel (%p244_p9) target bundleno = 576 (0x240), region = 48  ;;  %p275_p10 = scmp.lt.s32.totalorder (!%p244_p9), %s725_s16, 31 }
  0x12   : > { %s666_s25 = sshll.u32 (!%p244_p9), %s662_s22, 4  ;;  %s897_s6 = scalar_lea.hbm (!%p244_p9), %s1164_s7, 2  ;;  %s667_s25 = int_to_ptr.hbm [resolvable:$true] %s666_s25 }
  0x13   : > { %s891_s9 = sshra.s32 (!%p244_p9), %s667_s25, 4  ;;  %s892_s9 = int_to_ptr.hbm [resolvable:$true] %s891_s9 }
  0x14   : > { %s893_s10 = scalar_lea.hbm (!%p244_p9), %s892_s9, 1  ;;  %p898_p0 = scmp.lt.s32.totalorder (!%p244_p9), %s892_s9, %s1164_s7 }
  0x15   : > { %p894_p11 = scmp.ne.s32.totalorder (!%p244_p9), %s892_s9, %s893_s10  ;;  %p899_p1 = scmp.lt.s32.totalorder (!%p244_p9), %s897_s6, %s893_s10 }
  0x16   : > { %v805_v1 = vld [vmem:[%s1158_s1 + $0x18] sm:$0xff]  ;;  %v804_v2 = vld [vmem:[%s1158_s1 + $0x10] sm:$0xff]  ;;  %s1172_s16 = smov (!%p275_p10, %s725_s16), 31  ;;  %v803_v3 = vld [vmem:[%s1158_s1 + $0x8] sm:$0xff]  ;;  %vm341_vm0 = vcmask 523264   ;;  %vm580_vm1 = vcmask 261120  }
  0x17   : > { %370 = vmatpush.bf16.msra.mxu0 %v805_v1  ;;  %814 = vmatpush.bf16.msra.mxu2 %v805_v1  ;;  %s726_s19 = sshll.u32 %s1172_s16, 3  ;;  %v802_v4 = vld [vmem:[%s1158_s1] sm:$0xff]  ;;  %v813_v17 = vld [vmem:[%s1160_s3 + $0x38] sm:$0xff]  ;;  %v812_v18 = vld [vmem:[%s1160_s3 + $0x30] sm:$0xff]  ;;  %p895_p12 = pnand %p894_p11, %p1023_p5 }
  0x18   : > { %s1046_s24 = scalar_lea.vmem %s1157_s0, %s726_s19  ;;  %818 = vmatpush.bf16.msra.mxu1 %v813_v17  ;;  %819 = vmatpush.bf16.msra.mxu3 %v813_v17  ;;  %v811_v19 = vld [vmem:[%s1160_s3 + $0x28] sm:$0xff]  ;;  %v810_v32 = vld [vmem:[%s1160_s3 + $0x20] sm:$0xff]  ;;  %v809_v33 = vld [vmem:[%s1160_s3 + $0x18] sm:$0xff]  ;;  %s272_s19 = sand.u32 1, %s931_s27  }
  0x19   : > { %v281_v5 = vld [vmem:[%s1046_s24] sm:$0xff]  ;;  %v282_v6 = vld [vmem:[%s1046_s24 + $0x8] sm:$0xff]  ;;  %v283_v11 = vld [vmem:[%s1046_s24 + $0x10] sm:$0xff]  ;;  %s273_s23 = scalar_lea.vmem [#allocation3], %s272_s19  ;;  %s654_s30 = scalar_lea.sflag [#allocation4], %s272_s19 }
  0x1a   : > { %v289_v7 = vld [vmem:[%s1046_s24 + $0x40] sm:$0xff]  ;;  %v290_v8 = vld [vmem:[%s1046_s24 + $0x48] sm:$0xff]  ;;  %v297_v9 = vpack.c.bf16 %v282_v6, %v281_v5  ;;  %v284_v12 = vld [vmem:[%s1046_s24 + $0x18] sm:$0xff]  ;;  %p896_p13 = pneg %p895_p12  ;;  %p900_p2 = por %p899_p1, %p898_p0 }
  0x1b   : > { %371 = vmatpush.bf16.msra.mxu0 %v804_v2  ;;  %815 = vmatpush.bf16.msra.mxu2 %v804_v2  ;;  %v301_v10 = vpack.c.bf16 %v290_v8, %v289_v7  ;;  %v291_v13 = vld [vmem:[%s1046_s24 + $0x50] sm:$0xff]  ;;  %v292_v14 = vld [vmem:[%s1046_s24 + $0x58] sm:$0xff]  ;;  %v298_v15 = vpack.c.bf16 %v284_v12, %v283_v11  ;;  %v285_v20 = vld [vmem:[%s1046_s24 + $0x20] sm:$0xff] }
  0x1c   : > { %v302_v16 = vpack.c.bf16 %v292_v14, %v291_v13  ;;  %820 = vmatpush.bf16.msra.mxu1 %v812_v18  ;;  %821 = vmatpush.bf16.msra.mxu3 %v812_v18  ;;  %v286_v21 = vld [vmem:[%s1046_s24 + $0x28] sm:$0xff]  ;;  %v293_v22 = vld [vmem:[%s1046_s24 + $0x60] sm:$0xff]  ;;  %v287_v26 = vld [vmem:[%s1046_s24 + $0x30] sm:$0xff]  ;;  %p901_p3 = pnand %p900_p2, %p896_p13 }
  0x1d   : > { %v294_v23 = vld [vmem:[%s1046_s24 + $0x68] sm:$0xff]  ;;  %v299_v24 = vpack.c.bf16 %v286_v21, %v285_v20  ;;  %v288_v27 = vld [vmem:[%s1046_s24 + $0x38] sm:$0xff]  ;;  %v295_v28 = vld [vmem:[%s1046_s24 + $0x70] sm:$0xff] }
  0x1e   : > { %v303_v25 = vpack.c.bf16 %v294_v23, %v293_v22  ;;  %v296_v29 = vld [vmem:[%s1046_s24 + $0x78] sm:$0xff]  ;;  %v300_v30 = vpack.c.bf16 %v288_v27, %v287_v26  ;;  %v808_v34 = vld [vmem:[%s1160_s3 + $0x10] sm:$0xff]  ;;  %v807_v35 = vld [vmem:[%s1160_s3 + $0x8] sm:$0xff]  ;;  %s664_s24 = sshll.u32 %s273_s23, 4  ;;  %s665_s24 = int_to_ptr.vmem [resolvable:$true] %s664_s24 }
  0x1f   : > { %372 = vmatpush.bf16.msra.mxu0 %v803_v3  ;;  %816 = vmatpush.bf16.msra.mxu2 %v803_v3  ;;  %v304_v31 = vpack.c.bf16 %v296_v29, %v295_v28  ;;  %v806_v36 = vld [vmem:[%s1160_s3] sm:$0xff] }
  0x20   : > { %822 = vmatpush.bf16.msra.mxu1 %v811_v19  ;;  %823 = vmatpush.bf16.msra.mxu3 %v811_v19  ;;  %v875_v38 = vld [vmem:[%s1159_s2] ss:$0 sm:$0xff] }
  0x23   : > { %373 = vmatpush.bf16.msra.mxu0 %v802_v4  ;;  %817 = vmatpush.bf16.msra.mxu2 %v802_v4 }
  0x24   : > { %824 = vmatpush.bf16.msra.mxu1 %v810_v32  ;;  %825 = vmatpush.bf16.msra.mxu3 %v810_v32 }
  0x26   : > { %743 = vmatmul.msk.bf16.vlgmr.msra.gmra.mxu0 %vm341_vm0, %v297_v9  ;;  %747 = vmatmul.msk.bf16.vlgmr.msra.gmra.mxu2 %vm341_vm0, %v301_v10 }
  0x27   : > { %507 = vmatpush.bf16.msrb.mxu0 %v813_v17 }
  0x28   : > { %826 = vmatpush.bf16.msra.mxu1 %v809_v33  ;;  %827 = vmatpush.bf16.msra.mxu3 %v809_v33 }
  0x2b   : > { %508 = vmatpush.bf16.msrb.mxu0 %v812_v18 }
  0x2c   : > { %828 = vmatpush.bf16.msra.mxu1 %v808_v34  ;;  %829 = vmatpush.bf16.msra.mxu3 %v808_v34 }
  0x2f   : > { %509 = vmatpush.bf16.msrb.mxu0 %v811_v19 }
  0x30   : > { %830 = vmatpush.bf16.msra.mxu1 %v807_v35  ;;  %831 = vmatpush.bf16.msra.mxu3 %v807_v35 }
  0x33   : > { %510 = vmatpush.bf16.msrb.mxu0 %v810_v32 }
  0x34   : > { %832 = vmatpush.bf16.msra.mxu1 %v806_v36  ;;  %833 = vmatpush.bf16.msra.mxu3 %v806_v36 }
  0x36   : > { %744 = vmatmul.msk.bf16.gmra.mxu0 %vm341_vm0, %v298_v15  ;;  %748 = vmatmul.msk.bf16.gmra.mxu2 %vm341_vm0, %v302_v16 }
  0x37   : > { %511 = vmatpush.bf16.msrb.mxu0 %v809_v33 }
  0x3b   : > { %512 = vmatpush.bf16.msrb.mxu0 %v808_v34 }
  0x3f   : > { %513 = vmatpush.bf16.msrb.mxu0 %v807_v35 }
  0x43   : > { %514 = vmatpush.bf16.msrb.mxu0 %v806_v36 }
  0x46   : > { %745 = vmatmul.msk.bf16.gmra.mxu0 %vm341_vm0, %v299_v24  ;;  %749 = vmatmul.msk.bf16.gmra.mxu2 %vm341_vm0, %v303_v25 }
  0x56   : > { %746 = vmatmul.msk.bf16.gmra.mxu0 %vm341_vm0, %v300_v30  ;;  %750 = vmatmul.msk.bf16.gmra.mxu2 %vm341_vm0, %v304_v31 }
  0xa3   : > { %v375_v37 = vpop.f32.mrf.mxu0 }
  0xa4   : > { %v376_v39 = vadd.f32 %v875_v38, %v375_v37 }
  0xa6   : > { %v415_v43 = vmax.f32 %v376_v39, 0.0 }
  0xa9   : > { %v395_v40 = vpop.f32.mrf.mxu2 }
  0xaa   : > { %v396_v41 = vadd.f32 %v875_v38, %v395_v40 }
  0xab   : > { %v377_v42 = vpop.f32.mrf.mxu0 }
  0xac   : > { %v378_v44 = vadd.f32 %v875_v38, %v377_v42  ;;  %v423_v50 = vmax.f32 %v396_v41, 0.0 }
  0xae   : > { %v416_v45 = vmax.f32 %v378_v44, 0.0 }
  0xb0   : > { %v431_v46 = vpack.c.bf16 %v416_v45, %v415_v43 }
  0xb1   : > { %v397_v47 = vpop.f32.mrf.mxu2 }
  0xb2   : > { %v398_v48 = vadd.f32 %v875_v38, %v397_v47  ;;  %515 = vmatmul.bf16.vlgmr.msrb.gmra.mxu0 %v431_v46 }
  0xb3   : > { %v380_v49 = vpop.f32.mrf.mxu0 }
  0xb4   : > { %v424_v51 = vmax.f32 %v398_v48, 0.0  ;;  %v381_v53 = vadd.f32 %v875_v38, %v380_v49 }
  0xb6   : > { %v435_v52 = vpack.c.bf16 %v424_v51, %v423_v50  ;;  %v417_v56 = vmax.f32 %v381_v53, 0.0 }
  0xb9   : > { %v400_v54 = vpop.f32.mrf.mxu2 }
  0xba   : > { %v401_v59 = vadd.f32 %v875_v38, %v400_v54 }
  0xbb   : > { %v382_v55 = vpop.f32.mrf.mxu0 }
  0xbc   : > { %v383_v57 = vadd.f32 %v875_v38, %v382_v55  ;;  %v425_v0 = vmax.f32 %v401_v59, 0.0 }
  0xbe   : > { %v418_v58 = vmax.f32 %v383_v57, 0.0 }
  0xc0   : > { %v432_v60 = vpack.c.bf16 %v418_v58, %v417_v56 }
  0xc1   : > { %v402_v61 = vpop.f32.mrf.mxu2 }
  0xc2   : > { %v403_v62 = vadd.f32 %v875_v38, %v402_v61  ;;  %520 = vmatmul.bf16.vlgmr.msra.gmra.mxu1 %v432_v60 }
  0xc3   : > { %v385_v63 = vpop.f32.mrf.mxu0 }
  0xc4   : > { %v426_v1 = vmax.f32 %v403_v62, 0.0  ;;  %v386_v3 = vadd.f32 %v875_v38, %v385_v63 }
  0xc6   : > { %v436_v2 = vpack.c.bf16 %v426_v1, %v425_v0  ;;  %v419_v6 = vmax.f32 %v386_v3, 0.0  ;;  %v573_v0 = vld [vmem:[#allocation2] sm:$0x1]  ;;  %v941_v1 = vmov 0  }
  0xc7   : > { %874 = vset.pattern.permute.xlu0 %v941_v1 }
  0xc8   : > { %540 = vmatmul.bf16.vlgmr.msra.gmra.mxu3 %v436_v2  ;;  %576 = vperm.xlu0 %874, %v573_v0  }
  0xc9   : > { %v405_v4 = vpop.f32.mrf.mxu2 }
  0xca   : > { %v406_v9 = vadd.f32 %v875_v38, %v405_v4 }
  0xcb   : > { %v387_v5 = vpop.f32.mrf.mxu0 }
  0xcc   : > { %v388_v7 = vadd.f32 %v875_v38, %v387_v5  ;;  %v427_v14 = vmax.f32 %v406_v9, 0.0 }
  0xce   : > { %v420_v8 = vmax.f32 %v388_v7, 0.0 }
  0xd0   : > { %v433_v10 = vpack.c.bf16 %v420_v8, %v419_v6 }
  0xd1   : > { %v407_v11 = vpop.f32.mrf.mxu2 }
  0xd2   : > { %v408_v12 = vadd.f32 %v875_v38, %v407_v11  ;;  %525 = vmatmul.bf16.gmra.mxu1 %v433_v10 }
  0xd3   : > { %v390_v13 = vpop.f32.mrf.mxu0 }
  0xd4   : > { %v428_v15 = vmax.f32 %v408_v12, 0.0  ;;  %v391_v17 = vadd.f32 %v875_v38, %v390_v13 }
  0xd6   : > { %v437_v16 = vpack.c.bf16 %v428_v15, %v427_v14  ;;  %v421_v20 = vmax.f32 %v391_v17, 0.0  ;;  %v572_v17 = vld [vmem:[%s1162_s5] sm:$0x1] }
  0xd8   : > { %545 = vmatmul.bf16.gmra.mxu3 %v437_v16 }
  0xd9   : > { %v410_v18 = vpop.f32.mrf.mxu2 }
  0xda   : > { %v411_v23 = vadd.f32 %v875_v38, %v410_v18 }
  0xdb   : > { %v392_v19 = vpop.f32.mrf.mxu0 }
  0xdc   : > { %v393_v21 = vadd.f32 %v875_v38, %v392_v19  ;;  %v429_v27 = vmax.f32 %v411_v23, 0.0 }
  0xde   : > { %v422_v22 = vmax.f32 %v393_v21, 0.0 }
  0xe0   : > { %v434_v24 = vpack.c.bf16 %v422_v22, %v421_v20 }
  0xe1   : > { %v412_v25 = vpop.f32.mrf.mxu2 }
  0xe2   : > { %v413_v26 = vadd.f32 %v875_v38, %v412_v25  ;;  %530 = vmatmul.bf16.gmra.mxu1 %v434_v24  ;;  %v876_v38 = vld [vmem:[%s1161_s4] ss:$0 sm:$0xff] }
  0xe4   : > { %v430_v28 = vmax.f32 %v413_v26, 0.0 }
  0xe6   : > { %v438_v29 = vpack.c.bf16 %v430_v28, %v429_v27 }
  0xe8   : > { %550 = vmatmul.bf16.gmra.mxu3 %v438_v29 }
  0xf2   : > { %535 = vmatmul.bf16.gmra.mxu1 %v435_v52 }
 0x12f   : > { %v516_v4 = vpop.f32.mrf.mxu0 }
 0x130   : > { %v517_v14 = vadd.f32 %v876_v38, %v516_v4 }
 0x132   : > { %v556_v16 = vmax.f32 %v517_v14, 0.0 }
 0x137   : > { %v518_v11 = vpop.f32.mrf.mxu0 }
 0x138   : > { %v519_v12 = vadd.f32 %v876_v38, %v518_v11 }
 0x13a   : > { %v557_v15 = vmax.f32 %v519_v12, 0.0  ;;  %v577_v18 = vpop.permute.xlu0 %576 }
 0x13b   : > { %v579_v19 = vperm.slane %v577_v18, 0 }
 0x13f   : > { %v521_v30 = vpop.f32.mrf.mxu1 }
 0x140   : > { %v522_v9 = vadd.f32 %v876_v38, %v521_v30 }
 0x142   : > { %v558_v13 = vmax.f32 %v522_v9, 0.0 }
 0x147   : > { %v523_v31 = vpop.f32.mrf.mxu1 }
 0x148   : > { %v524_v7 = vadd.f32 %v876_v38, %v523_v31 }
 0x14a   : > { %v559_v10 = vmax.f32 %v524_v7, 0.0 }
 0x14b   : > { %v541_v32 = vpop.f32.mrf.mxu3 }
 0x14c   : > { %v542_v53 = vadd.f32 %v876_v38, %v541_v32 }
 0x14e   : > { %v566_v56 = vmax.f32 %v542_v53, 0.0 }
 0x14f   : > { %v526_v34 = vpop.f32.mrf.mxu1 }
 0x150   : > { %v527_v5 = vadd.f32 %v876_v38, %v526_v34 }
 0x152   : > { %v560_v8 = vmax.f32 %v527_v5, 0.0 }
 0x153   : > { %v543_v33 = vpop.f32.mrf.mxu3 }
 0x154   : > { %v544_v51 = vadd.f32 %v876_v38, %v543_v33 }
 0x156   : > { %v567_v54 = vmax.f32 %v544_v51, 0.0 }
 0x157   : > { %v528_v36 = vpop.f32.mrf.mxu1 }
 0x158   : > { %v529_v2 = vadd.f32 %v876_v38, %v528_v36 }
 0x15a   : > { %v561_v6 = vmax.f32 %v529_v2, 0.0 }
 0x15b   : > { %v546_v35 = vpop.f32.mrf.mxu3 }
 0x15c   : > { %v547_v49 = vadd.f32 %v876_v38, %v546_v35 }
 0x15e   : > { %v568_v52 = vmax.f32 %v547_v49, 0.0 }
 0x15f   : > { %v531_v39 = vpop.f32.mrf.mxu1 }
 0x160   : > { %v532_v62 = vadd.f32 %v876_v38, %v531_v39 }
 0x162   : > { %v562_v3 = vmax.f32 %v532_v62, 0.0 }
 0x163   : > { %v548_v37 = vpop.f32.mrf.mxu3 }
 0x164   : > { %v549_v46 = vadd.f32 %v876_v38, %v548_v37 }
 0x166   : > { %v569_v50 = vmax.f32 %v549_v46, 0.0 }
 0x167   : > { %v533_v41 = vpop.f32.mrf.mxu1 }
 0x168   : > { %v534_v60 = vadd.f32 %v876_v38, %v533_v41 }
 0x16a   : > { %v563_v63 = vmax.f32 %v534_v60, 0.0 }
 0x16b   : > { %v551_v40 = vpop.f32.mrf.mxu3 }
 0x16c   : > { %v552_v44 = vadd.f32 %v876_v38, %v551_v40 }
 0x16e   : > { %v570_v47 = vmax.f32 %v552_v44, 0.0 }
 0x16f   : > { %v536_v48 = vpop.f32.mrf.mxu1 }
 0x170   : > { %v537_v58 = vadd.f32 %v876_v38, %v536_v48 }
 0x172   : > { %v564_v61 = vmax.f32 %v537_v58, 0.0 }
 0x173   : > { %v553_v42 = vpop.f32.mrf.mxu3 }
 0x174   : > { %v554_v43 = vadd.f32 %v876_v38, %v553_v42 }
 0x176   : > { %v571_v45 = vmax.f32 %v554_v43, 0.0 }
 0x177   : > { %v538_v55 = vpop.f32.mrf.mxu1 }
 0x178   : > { %783 = vmatpush.xpose.msk.msrb.mxu2 %vm580_vm1, %v571_v45  ;;  %v539_v57 = vadd.f32 %v876_v38, %v538_v55 }
 0x17a   : > { %v565_v59 = vmax.f32 %v539_v57, 0.0 }
 0x17c   : > { %784 = vmatpush.xpose.msk.msrb.mxu2 %vm580_vm1, %v570_v47 }
 0x180   : > { %785 = vmatpush.xpose.msk.msrb.mxu2 %vm580_vm1, %v569_v50 }
 0x184   : > { %786 = vmatpush.xpose.msk.msrb.mxu2 %vm580_vm1, %v568_v52 }
 0x188   : > { %787 = vmatpush.xpose.msk.msrb.mxu2 %vm580_vm1, %v567_v54 }
 0x18c   : > { %788 = vmatpush.xpose.msk.msrb.mxu2 %vm580_vm1, %v566_v56 }
 0x190   : > { %789 = vmatpush.xpose.msk.msrb.mxu2 %vm580_vm1, %v565_v59 }
 0x194   : > { %790 = vmatpush.xpose.msk.msrb.mxu2 %vm580_vm1, %v564_v61 }
 0x198   : > { %791 = vmatpush.xpose.msk.msrb.mxu2 %vm580_vm1, %v563_v63 }
 0x19c   : > { %792 = vmatpush.xpose.msk.msrb.mxu2 %vm580_vm1, %v562_v3 }
 0x1a0   : > { %793 = vmatpush.xpose.msk.msrb.mxu2 %vm580_vm1, %v561_v6 }
 0x1a4   : > { %794 = vmatpush.xpose.msk.msrb.mxu2 %vm580_vm1, %v560_v8 }
 0x1a8   : > { %795 = vmatpush.xpose.msk.msrb.mxu2 %vm580_vm1, %v559_v10 }
 0x1ac   : > { %796 = vmatpush.xpose.msk.msrb.mxu2 %vm580_vm1, %v558_v13 }
 0x1b0   : > { %797 = vmatpush.xpose.msk.msrb.mxu2 %vm580_vm1, %v557_v15 }
 0x1b4   : > { %798 = vmatpush.xpose.msk.msrb.mxu2 %vm580_vm1, %v556_v16 }
 0x1b7   : > { %799 = vmatmul.msk.f32.vlgmr.msrb.gmra.mxu2 %vm580_vm1, %v572_v17 }
 0x23a   : > { %v649_v20 = vpop.f32.mrf.mxu2 }
 0x23b   : > { %v650_v21 = vadd.f32 %v649_v20, %v579_v19 }
 0x23d   : > { %652 = vst [vmem:[%s273_s23] sm:$0x1] %v650_v21 }
 0x23e   : > { %904 = shalt.err (!%p901_p3)
}
 0x23f   : > { %834 = dma.vmem_to_hbm [thread:$0]  (%p1023_p5), %s665_s24, 16, %s667_s25, %s654_s30  }
 0x240 PF: > { %p840_p4 = scmp.ge.s32.totalorder %s939_s29, 2  ;;  %s678_s18 = sand.u32 1, %s927_s26  }
 0x241   : > { %s679_s19 = scalar_lea.sflag [#allocation4], %s678_s18 }
 0x242   : > { %p837_p7 = pnand %p840_p4, %p1027_p6 }
 0x244   : > { %p838_p8 = pneg %p837_p7 }
 0x246   : > { %922 = dma.done.wait (%p838_p8), %s679_s19, 16  }
 0x247   : > { %924 = vsyncadd (%p838_p8), %s679_s19, 4294967280  ;;  %p19_p9 = scmp.ge.s32.totalorder %s1010_s8, 4   ;;  %s1167_s26 = smov %s931_s27 }
 0x248   : > { %s1168_s27 = smov %s935_s28  ;;  %s1169_s28 = smov %s1021_s11 }
 0x249   : > { %s1170_s29 = smov %s1010_s8  ;;  %21 = sbr.rel (!%p19_p9) target bundleno = 6 (0x6), region = 83 }
 0x24e   :  { %684 = vsyncpa [#allocation4], 1 }
 0x24f   :  { %686 = vsyncpa [#allocation4 + $0x1], 1 }

</bundles_post_ra>
